<compile_context>
chip_gen: v5e
topology: v5e:2x2
jax: 0.10.0
libtpu: 0.0.40
codegen_flags: <defaults>
</compile_context>

<pallas_src>
import jax
import jax.numpy as jnp
from jax.experimental import pallas as pl
from jax.experimental.pallas import tpu as pltpu

LANE = 128
SUBLANE = 8
PACK = 16          # bf16 sublane-pack alignment for the contraction dim
NEG_PAD = -1e30    # f32 bias on padded action lanes -> exp() == 0


def _round_up(x, m):
    return ((x + m - 1) // m) * m


def actor_kernel(x_ref, w1_ref, b1_ref, w2_ref, b2_ref, w3_ref, b3_ref, o_ref):
    # fc1 + ReLU : bf16 MXU operands, f32 accumulation, f32 elementwise.
    h1 = jnp.dot(x_ref[...], w1_ref[...], preferred_element_type=jnp.float32)
    h1 = jnp.maximum(h1 + b1_ref[...], 0.0)
    # fc2 + ReLU
    h2 = jnp.dot(h1.astype(jnp.bfloat16), w2_ref[...],
                 preferred_element_type=jnp.float32)
    h2 = jnp.maximum(h2 + b2_ref[...], 0.0)
    # fc3 logits; padded action lanes carry a very negative f32 bias.
    logits = jnp.dot(h2.astype(jnp.bfloat16), w3_ref[...],
                     preferred_element_type=jnp.float32)
    logits = logits + b3_ref[...]
    # Softmax over the action (lane) axis. Exact f32 division so each row
    # sums to 1 (the approx reciprocal previously broke the sum-to-one check).
    m = jnp.max(logits, axis=-1, keepdims=True)
    e = jnp.exp(logits - m)
    denom = jnp.sum(e, axis=-1, keepdims=True)
    o_ref[...] = (e / denom).astype(o_ref.dtype)


def prepare_actor_params(params):
    """Pad and bf16-cast the weights ONCE; reuse the result across calls."""
    w1, b1, w2, b2, w3, b3 = params
    in_dim, f1 = w1.shape
    f2 = w2.shape[1]
    n_actions = w3.shape[1]

    K = _round_up(in_dim, PACK)       # contraction dim: 16-align only
    F1 = _round_up(f1, LANE)
    F2 = _round_up(f2, LANE)
    NA = _round_up(n_actions, LANE)   # lane-dense output

    def pad2(a, rows, cols, fill=0.0):
        return jnp.pad(a, ((0, rows - a.shape[0]), (0, cols - a.shape[1])),
                       constant_values=fill)

    w1_p = pad2(jnp.asarray(w1, jnp.float32), K, F1).astype(jnp.bfloat16)
    w2_p = pad2(jnp.asarray(w2, jnp.float32), F1, F2).astype(jnp.bfloat16)
    w3_p = pad2(jnp.asarray(w3, jnp.float32), F2, NA).astype(jnp.bfloat16)
    b1_p = pad2(jnp.asarray(b1, jnp.float32).reshape(1, -1), 1, F1)
    b2_p = pad2(jnp.asarray(b2, jnp.float32).reshape(1, -1), 1, F2)
    b3_p = pad2(jnp.asarray(b3, jnp.float32).reshape(1, -1), 1, NA, fill=NEG_PAD)

    dims = dict(in_dim=in_dim, n_actions=n_actions, K=K, F1=F1, F2=F2, NA=NA)
    return (w1_p, b1_p, w2_p, b2_p, w3_p, b3_p), dims


def actor_forward(state, prepped, dims, *, tb_max=2048, out_dtype=jnp.float32):
    """state: [B, input_dim] f32 -> probs: [B, n_actions] (out_dtype)."""
    w1_p, b1_p, w2_p, b2_p, w3_p, b3_p = prepped
    B, in_dim = state.shape
    K, F1, F2, NA = dims["K"], dims["F1"], dims["F2"], dims["NA"]
    n_actions = dims["n_actions"]

    # Batch tiling: multiple of 8 sublanes, large tile to amortize per-step
    # overhead; for big batches force >= 2 balanced grid steps (v7x megacore).
    b8 = _round_up(B, SUBLANE)
    TB = _round_up(min(tb_max, b8), SUBLANE)
    if b8 >= 1024 and b8 <= TB:
        TB = _round_up(pl.cdiv(b8, 2), SUBLANE)
    B_pad = pl.cdiv(b8, TB) * TB

    # Single activation pad+cast (fuses into one op under jit).
    x_p = jnp.pad(state.astype(jnp.bfloat16),
                  ((0, B_pad - B), (0, K - in_dim)))

    flops = 2 * B_pad * (K * F1 + F1 * F2 + F2 * NA)
    bytes_accessed = (B_pad * K * 2
                      + (K * F1 + F1 * F2 + F2 * NA) * 2
                      + (F1 + F2 + NA) * 4
                      + B_pad * NA * jnp.dtype(out_dtype).itemsize)
    cost = pl.CostEstimate(flops=flops, transcendentals=B_pad * NA,
                           bytes_accessed=bytes_accessed)

    resident = lambda i: (0, 0)   # weights/biases DMA'd once, stay resident
    streamed = lambda i: (i, 0)   # activations/output tile over the batch

    out = pl.pallas_call(
        actor_kernel,
        out_shape=jax.ShapeDtypeStruct((B_pad, NA), out_dtype),
        grid=(B_pad // TB,),
        in_specs=[
            pl.BlockSpec((TB, K), streamed),     # x
            pl.BlockSpec((K, F1), resident),     # w1
            pl.BlockSpec((1, F1), resident),     # b1
            pl.BlockSpec((F1, F2), resident),    # w2
            pl.BlockSpec((1, F2), resident),     # b2
            pl.BlockSpec((F2, NA), resident),    # w3
            pl.BlockSpec((1, NA), resident),     # b3
        ],
        out_specs=pl.BlockSpec((TB, NA), streamed),
        compiler_params=pltpu.CompilerParams(
            dimension_semantics=("parallel",)),
        cost_estimate=cost,
    )(x_p, w1_p, b1_p, w2_p, b2_p, w3_p, b3_p)

    return out[:B, :n_actions]


def actor_reference(state, params):
    """Pure-JAX f32 reference of the same forward pass."""
    w1, b1, w2, b2, w3, b3 = params
    h1 = jnp.maximum(state @ w1 + b1.reshape(1, -1), 0.0)
    h2 = jnp.maximum(h1 @ w2 + b2.reshape(1, -1), 0.0)
    logits = h2 @ w3 + b3.reshape(1, -1)
    return jax.nn.softmax(logits, axis=-1)


def init_params(key, input_dim, fc1_dims, fc2_dims, n_actions):
    """Deterministic synthetic init (shapes match the nn.Linear layers)."""
    ks = jax.random.split(key, 6)

    def lin(kw, kb, fan_in, fan_out):
        bound = 1.0 / jnp.sqrt(float(fan_in))
        w = jax.random.uniform(kw, (fan_in, fan_out), jnp.float32, -bound, bound)
        b = jax.random.uniform(kb, (fan_out,), jnp.float32, -bound, bound)
        return w, b

    w1, b1 = lin(ks[0], ks[1], input_dim, fc1_dims)
    w2, b2 = lin(ks[2], ks[3], fc1_dims, fc2_dims)
    w3, b3 = lin(ks[4], ks[5], fc2_dims, n_actions)
    return (w1, b1, w2, b2, w3, b3)


if __name__ == "__main__":
    key = jax.random.PRNGKey(0)
    k_params, k_state = jax.random.split(key)

    batch = 8
    input_dim = 8        # input_dims=(8,)
    fc1_dims = 256
    fc2_dims = 256
    n_actions = 4

    params = init_params(k_params, input_dim, fc1_dims, fc2_dims, n_actions)
    state = jax.random.normal(k_state, (batch, input_dim), jnp.float32)

    # Pad/cast weights once; per-call path is just x pad+cast + the kernel.
    prepped, dims = prepare_actor_params(params)
    fwd = jax.jit(lambda s, p: actor_forward(s, p, dims))

    probs = fwd(state, prepped)
    probs = jax.block_until_ready(probs)

    # sanity: rows are valid categorical distributions and match the f32 ref
    # (bf16 matmul operands -> loose elementwise tolerance).
    ref = actor_reference(state, params)
    assert probs.shape == (batch, n_actions)
    assert bool(jnp.all(probs >= 0.0))
    assert bool(jnp.allclose(jnp.sum(probs, axis=-1), 1.0, atol=1e-3))
    assert bool(jnp.max(jnp.abs(probs - ref)) < 0.05)

    print("KERNEL_OK")
</pallas_src>

<mosaic_0001>
module attributes {stable_mosaic.version = 11 : i64} {
  func.func @actor_kernel(%arg0: i32, %arg1: memref<8x16xbf16, #tpu.memory_space<vmem>>, %arg2: memref<16x256xbf16, #tpu.memory_space<vmem>>, %arg3: memref<1x256xf32, #tpu.memory_space<vmem>>, %arg4: memref<256x256xbf16, #tpu.memory_space<vmem>>, %arg5: memref<1x256xf32, #tpu.memory_space<vmem>>, %arg6: memref<256x128xbf16, #tpu.memory_space<vmem>>, %arg7: memref<1x128xf32, #tpu.memory_space<vmem>>, %arg8: memref<8x128xf32, #tpu.memory_space<vmem>>) attributes {dimension_semantics = [#tpu.dimension_semantics<parallel>], iteration_bounds = array<i64: 1>, scalar_prefetch = 0 : i64, scratch_operands = 0 : i64, tpu.core_type = #tpu.core_type<tc>, window_params = [{transform_indices = @transform_0, window_bounds = array<i64: 8, 16>}, {pipeline_mode = #tpu.pipeline_mode<synchronous>, transform_indices = @transform_1, window_bounds = array<i64: 16, 256>}, {pipeline_mode = #tpu.pipeline_mode<synchronous>, transform_indices = @transform_2, window_bounds = array<i64: 1, 256>}, {pipeline_mode = #tpu.pipeline_mode<synchronous>, transform_indices = @transform_3, window_bounds = array<i64: 256, 256>}, {pipeline_mode = #tpu.pipeline_mode<synchronous>, transform_indices = @transform_4, window_bounds = array<i64: 1, 256>}, {pipeline_mode = #tpu.pipeline_mode<synchronous>, transform_indices = @transform_5, window_bounds = array<i64: 256, 128>}, {pipeline_mode = #tpu.pipeline_mode<synchronous>, transform_indices = @transform_6, window_bounds = array<i64: 1, 128>}, {transform_indices = @transform_7, window_bounds = array<i64: 8, 128>}]} {
    %c0 = arith.constant 0 : index
    %c0_0 = arith.constant 0 : index
    %0 = vector.load %arg1[%c0, %c0_0] : memref<8x16xbf16, #tpu.memory_space<vmem>>, vector<8x16xbf16>
    %c0_1 = arith.constant 0 : index
    %c0_2 = arith.constant 0 : index
    %1 = vector.load %arg2[%c0_1, %c0_2] : memref<16x256xbf16, #tpu.memory_space<vmem>>, vector<16x256xbf16>
    %cst = arith.constant dense<0.000000e+00> : vector<8x256xf32>
    %2 = tpu.matmul %0, %1, %cst {dimension_numbers = #tpu.dot_dimension_numbers<[1], [0], [0], [1], [0, 0, 1, 1], [], []>} : vector<8x16xbf16>, vector<16x256xbf16>, vector<8x256xf32> -> vector<8x256xf32>
    %c0_3 = arith.constant 0 : index
    %c0_4 = arith.constant 0 : index
    %3 = vector.load %arg3[%c0_3, %c0_4] : memref<1x256xf32, #tpu.memory_space<vmem>>, vector<1x256xf32>
    %4 = vector.broadcast %3 : vector<1x256xf32> to vector<8x256xf32>
    %5 = arith.addf %2, %4 : vector<8x256xf32>
    %cst_5 = arith.constant 0.000000e+00 : f32
    %6 = vector.broadcast %cst_5 : f32 to vector<8x256xf32>
    %7 = arith.maximumf %5, %6 : vector<8x256xf32>
    %8 = arith.truncf %7 : vector<8x256xf32> to vector<8x256xbf16>
    %c0_6 = arith.constant 0 : index
    %c0_7 = arith.constant 0 : index
    %9 = vector.load %arg4[%c0_6, %c0_7] : memref<256x256xbf16, #tpu.memory_space<vmem>>, vector<256x256xbf16>
    %cst_8 = arith.constant dense<0.000000e+00> : vector<8x256xf32>
    %10 = tpu.matmul %8, %9, %cst_8 {dimension_numbers = #tpu.dot_dimension_numbers<[1], [0], [0], [1], [0, 0, 1, 1], [], []>} : vector<8x256xbf16>, vector<256x256xbf16>, vector<8x256xf32> -> vector<8x256xf32>
    %c0_9 = arith.constant 0 : index
    %c0_10 = arith.constant 0 : index
    %11 = vector.load %arg5[%c0_9, %c0_10] : memref<1x256xf32, #tpu.memory_space<vmem>>, vector<1x256xf32>
    %12 = vector.broadcast %11 : vector<1x256xf32> to vector<8x256xf32>
    %13 = arith.addf %10, %12 : vector<8x256xf32>
    %cst_11 = arith.constant 0.000000e+00 : f32
    %14 = vector.broadcast %cst_11 : f32 to vector<8x256xf32>
    %15 = arith.maximumf %13, %14 : vector<8x256xf32>
    %16 = arith.truncf %15 : vector<8x256xf32> to vector<8x256xbf16>
    %c0_12 = arith.constant 0 : index
    %c0_13 = arith.constant 0 : index
    %17 = vector.load %arg6[%c0_12, %c0_13] : memref<256x128xbf16, #tpu.memory_space<vmem>>, vector<256x128xbf16>
    %cst_14 = arith.constant dense<0.000000e+00> : vector<8x128xf32>
    %18 = tpu.matmul %16, %17, %cst_14 {dimension_numbers = #tpu.dot_dimension_numbers<[1], [0], [0], [1], [0, 0, 1, 1], [], []>} : vector<8x256xbf16>, vector<256x128xbf16>, vector<8x128xf32> -> vector<8x128xf32>
    %c0_15 = arith.constant 0 : index
    %c0_16 = arith.constant 0 : index
    %19 = vector.load %arg7[%c0_15, %c0_16] : memref<1x128xf32, #tpu.memory_space<vmem>>, vector<1x128xf32>
    %20 = vector.broadcast %19 : vector<1x128xf32> to vector<8x128xf32>
    %21 = arith.addf %18, %20 : vector<8x128xf32>
    %cst_17 = arith.constant dense<0xFF800000> : vector<8xf32>
    %22 = vector.multi_reduction <maximumf>, %21, %cst_17 [1] : vector<8x128xf32> to vector<8xf32>
    %23 = vector.shape_cast %22 : vector<8xf32> to vector<8x1xf32>
    %24 = vector.broadcast %23 : vector<8x1xf32> to vector<8x128xf32>
    %25 = arith.subf %21, %24 : vector<8x128xf32>
    %26 = math.exp %25 : vector<8x128xf32>
    %cst_18 = arith.constant dense<0.000000e+00> : vector<8xf32>
    %27 = vector.multi_reduction <add>, %26, %cst_18 [1] : vector<8x128xf32> to vector<8xf32>
    %28 = vector.shape_cast %27 : vector<8xf32> to vector<8x1xf32>
    %29 = vector.broadcast %28 : vector<8x1xf32> to vector<8x128xf32>
    %30 = arith.divf %26, %29 : vector<8x128xf32>
    %c0_19 = arith.constant 0 : index
    %c0_20 = arith.constant 0 : index
    %31 = vector.load %arg8[%c0_19, %c0_20] : memref<8x128xf32, #tpu.memory_space<vmem>>, vector<8x128xf32>
    tpu.vector_store %arg8[%c0_19, %c0_20], %30 {strides = array<i32>} : memref<8x128xf32, #tpu.memory_space<vmem>>, vector<8x128xf32>,
    return
  }
  func.func @transform_0(%arg0: i32) -> (i32, i32) {
    %c0_i32 = arith.constant 0 : i32
    %c0_i32_0 = arith.constant 0 : i32
    return %arg0, %c0_i32 : i32, i32
  }
  func.func @transform_1(%arg0: i32) -> (i32, i32) {
    %c0_i32 = arith.constant 0 : i32
    %c0_i32_0 = arith.constant 0 : i32
    %c0_i32_1 = arith.constant 0 : i32
    return %c0_i32, %c0_i32_0 : i32, i32
  }
  func.func @transform_2(%arg0: i32) -> (i32, i32) {
    %c0_i32 = arith.constant 0 : i32
    %c0_i32_0 = arith.constant 0 : i32
    %c0_i32_1 = arith.constant 0 : i32
    return %c0_i32, %c0_i32_0 : i32, i32
  }
  func.func @transform_3(%arg0: i32) -> (i32, i32) {
    %c0_i32 = arith.constant 0 : i32
    %c0_i32_0 = arith.constant 0 : i32
    %c0_i32_1 = arith.constant 0 : i32
    return %c0_i32, %c0_i32_0 : i32, i32
  }
  func.func @transform_4(%arg0: i32) -> (i32, i32) {
    %c0_i32 = arith.constant 0 : i32
    %c0_i32_0 = arith.constant 0 : i32
    %c0_i32_1 = arith.constant 0 : i32
    return %c0_i32, %c0_i32_0 : i32, i32
  }
  func.func @transform_5(%arg0: i32) -> (i32, i32) {
    %c0_i32 = arith.constant 0 : i32
    %c0_i32_0 = arith.constant 0 : i32
    %c0_i32_1 = arith.constant 0 : i32
    return %c0_i32, %c0_i32_0 : i32, i32
  }
  func.func @transform_6(%arg0: i32) -> (i32, i32) {
    %c0_i32 = arith.constant 0 : i32
    %c0_i32_0 = arith.constant 0 : i32
    %c0_i32_1 = arith.constant 0 : i32
    return %c0_i32, %c0_i32_0 : i32, i32
  }
  func.func @transform_7(%arg0: i32) -> (i32, i32) {
    %c0_i32 = arith.constant 0 : i32
    %c0_i32_0 = arith.constant 0 : i32
    return %arg0, %c0_i32 : i32, i32
  }
}

</mosaic_0001>

<bundles_post_ra>
// kernel: _lambda_.1
= control target key start
LH: loop header
LB: loop body
LE: loop exit
PB: predicated region body
PF: predicated region fallthrough
CT: control target
= control target key end

     0   :  { %12 = vsyncpa [#allocation3], 0  ;;  %s949_s0 = inlined_call_operand.vmem [shape: bf16[8,16], index: 0, kind: input, shape index: {}]   ;;  %s950_s1 = inlined_call_operand.vmem [shape: bf16[16,256], index: 1, kind: input, shape index: {}]   ;;  %s951_s2 = inlined_call_operand.vmem [shape: f32[1,256], index: 2, kind: input, shape index: {}]   ;;  %s952_s3 = inlined_call_operand.hbm [shape: bf16[256,256], index: 3, kind: input, shape index: {}]   ;;  %s953_s4 = inlined_call_operand.vmem [shape: f32[1,256], index: 4, kind: input, shape index: {}]   ;;  %s954_s5 = inlined_call_operand.hbm [shape: bf16[256,128], index: 5, kind: input, shape index: {}]   ;;  %s955_s6 = inlined_call_operand.vmem [shape: f32[1,128], index: 6, kind: input, shape index: {}]   ;;  %s956_s7 = inlined_call_operand.vmem [shape: f32[8,128], index: 7, kind: output, shape index: {}]  }
   0x1   :  { %s24_s26 = sshll.u32 %s952_s3, 4  ;;  %s25_s26 = int_to_ptr.hbm [resolvable:$true] %s24_s26 }
   0x2   :  { %13 = vsyncpa [#allocation5], 0  ;;  %s868_s27 = smov [#allocation2]   ;;  %s39_s8 = sshll.u32 %s954_s5, 4  ;;  %s40_s8 = int_to_ptr.hbm [resolvable:$true] %s39_s8 }
   0x3   :  { %s26_s28 = sshll.u32 %s868_s27, 4  ;;  %s869_s9 = smov 128   ;;  %s27_s28 = int_to_ptr.vmem [resolvable:$true] %s26_s28 }
   0x4   :  { %s870_s10 = smov 8   ;;  %s871_s11 = smov [#allocation4]  }
   0x5   :  { %32 = dma.hbm_to_vmem [thread:$0]  %s25_s26, 4096, %s27_s28, [#allocation3], %s869_s9, %s869_s9, %s870_s10  }
   0x6   :  { %s41_s12 = sshll.u32 %s871_s11, 4  ;;  %s872_s13 = smov 64   ;;  %s42_s12 = int_to_ptr.vmem [resolvable:$true] %s41_s12 }
   0x7   :  { %s873_s14 = smov 4  }
   0x8   :  { %47 = dma.hbm_to_vmem [thread:$0]  %s40_s8, 2048, %s42_s12, [#allocation5], %s872_s13, %s872_s13, %s873_s14  }
   0x9   :  { %864 = dma.done.wait [#allocation3], 4096  }
   0xa   :  { %865 = vsyncadd [#allocation3], 4294963200 }
   0xb   :  { %866 = dma.done.wait [#allocation5], 2048  }
   0xc   :  { %867 = vsyncadd [#allocation5], 4294965248  ;;  %vm78_vm0 = vcmask 130048   ;;  %v555_v0 = vld [vmem:[%s950_s1] sm:$0xf] }
   0xd   :  { %v756_v1 = vld [vmem:[%s950_s1 + $0x4] sm:$0xf0]  ;;  %v755_v2 = vld [vmem:[%s950_s1 + $0x4] sm:$0xf]  ;;  %v557_v4 = vld [vmem:[%s950_s1 + $0x8] sm:$0xf0] }
   0xe   :  { %v556_v3 = vor.u32 %v756_v1, %v555_v0  ;;  %v59_v5 = vld [vmem:[%s949_s0] sm:$0xf]  ;;  %v621_v6 = vld [vmem:[#allocation2 + $0x70] sm:$0xf]  ;;  %v560_v7 = vor.u32 %v755_v2, %v557_v4  ;;  %v772_v8 = vld [vmem:[#allocation2 + $0x74] sm:$0xf0] }
   0xf   :  { %v685_v9 = vld [vmem:[#allocation2 + $0xf0] sm:$0xf]  ;;  %v788_v10 = vld [vmem:[#allocation2 + $0xf4] sm:$0xf0]  ;;  %v622_v11 = vor.u32 %v772_v8, %v621_v6  ;;  %v771_v13 = vld [vmem:[#allocation2 + $0x74] sm:$0xf] }
  0x10   :  { %89 = vmatpush.bf16.msra.mxu0 %v556_v3  ;;  %v686_v12 = vor.u32 %v788_v10, %v685_v9  ;;  %v623_v14 = vld [vmem:[#allocation2 + $0x78] sm:$0xf0]  ;;  %v787_v15 = vld [vmem:[#allocation2 + $0xf4] sm:$0xf]  ;;  %102 = vmatpush.bf16.msra.mxu1 %v560_v7  ;;  %v613_v18 = vld [vmem:[#allocation2 + $0x60] sm:$0xf] }
  0x11   :  { %v626_v16 = vor.u32 %v771_v13, %v623_v14  ;;  %v687_v17 = vld [vmem:[#allocation2 + $0xf8] sm:$0xf0]  ;;  %v770_v19 = vld [vmem:[#allocation2 + $0x64] sm:$0xf0]  ;;  %310 = vmatpush.bf16.msra.mxu2 %v622_v11  ;;  %v677_v22 = vld [vmem:[#allocation2 + $0xe0] sm:$0xf] }
  0x12   :  { %323 = vmatpush.bf16.msra.mxu3 %v686_v12  ;;  %v690_v20 = vor.u32 %v787_v15, %v687_v17  ;;  %v614_v21 = vor.u32 %v770_v19, %v613_v18  ;;  %v786_v23 = vld [vmem:[#allocation2 + $0xe4] sm:$0xf0]  ;;  %v769_v24 = vld [vmem:[#allocation2 + $0x64] sm:$0xf]  ;;  %v615_v26 = vld [vmem:[#allocation2 + $0x68] sm:$0xf0] }
  0x13   :  { %561 = vmatmul.msk.bf16.vlgmr.msra.gmra.mxu0 %vm78_vm0, %v59_v5  ;;  %v678_v25 = vor.u32 %v786_v23, %v677_v22  ;;  %v785_v27 = vld [vmem:[#allocation2 + $0xe4] sm:$0xf]  ;;  %v679_v28 = vld [vmem:[#allocation2 + $0xe8] sm:$0xf0]  ;;  %562 = vmatmul.msk.bf16.vlgmr.msra.gmra.mxu1 %vm78_vm0, %v59_v5  ;;  %v618_v29 = vor.u32 %v769_v24, %v615_v26  ;;  %v605_v30 = vld [vmem:[#allocation2 + $0x50] sm:$0xf] }
  0x14   :  { %336 = vmatpush.bf16.msrb.mxu0 %v626_v16  ;;  %v768_v31 = vld [vmem:[#allocation2 + $0x54] sm:$0xf0]  ;;  %v669_v32 = vld [vmem:[#allocation2 + $0xd0] sm:$0xf]  ;;  %349 = vmatpush.bf16.msrb.mxu1 %v690_v20  ;;  %v682_v33 = vor.u32 %v785_v27, %v679_v28  ;;  %v767_v35 = vld [vmem:[#allocation2 + $0x54] sm:$0xf] }
  0x15   :  { %v784_v34 = vld [vmem:[#allocation2 + $0xd4] sm:$0xf0]  ;;  %v607_v36 = vld [vmem:[#allocation2 + $0x58] sm:$0xf0]  ;;  %311 = vmatpush.bf16.msra.mxu2 %v614_v21  ;;  %v606_v37 = vor.u32 %v768_v31, %v605_v30  ;;  %v783_v39 = vld [vmem:[#allocation2 + $0xd4] sm:$0xf] }
  0x16   :  { %324 = vmatpush.bf16.msra.mxu3 %v678_v25  ;;  %v670_v38 = vor.u32 %v784_v34, %v669_v32  ;;  %v671_v40 = vld [vmem:[#allocation2 + $0xd8] sm:$0xf0]  ;;  %v597_v41 = vld [vmem:[#allocation2 + $0x40] sm:$0xf]  ;;  %v766_v42 = vld [vmem:[#allocation2 + $0x44] sm:$0xf0]  ;;  %v610_v45 = vor.u32 %v767_v35, %v607_v36 }
  0x17   :  { %v661_v43 = vld [vmem:[#allocation2 + $0xc0] sm:$0xf]  ;;  %v782_v44 = vld [vmem:[#allocation2 + $0xc4] sm:$0xf0]  ;;  %v674_v46 = vor.u32 %v783_v39, %v671_v40  ;;  %v765_v47 = vld [vmem:[#allocation2 + $0x44] sm:$0xf]  ;;  %v598_v49 = vor.u32 %v766_v42, %v597_v41 }
  0x18   :  { %337 = vmatpush.bf16.msrb.mxu0 %v618_v29  ;;  %350 = vmatpush.bf16.msrb.mxu1 %v682_v33  ;;  %v599_v48 = vld [vmem:[#allocation2 + $0x48] sm:$0xf0]  ;;  %v662_v50 = vor.u32 %v782_v44, %v661_v43  ;;  %v781_v51 = vld [vmem:[#allocation2 + $0xc4] sm:$0xf]  ;;  %v589_v53 = vld [vmem:[#allocation2 + $0x30] sm:$0xf] }
  0x19   :  { %312 = vmatpush.bf16.msra.mxu2 %v606_v37  ;;  %v663_v52 = vld [vmem:[#allocation2 + $0xc8] sm:$0xf0]  ;;  %v764_v54 = vld [vmem:[#allocation2 + $0x34] sm:$0xf0]  ;;  %v653_v55 = vld [vmem:[#allocation2 + $0xb0] sm:$0xf]  ;;  %v602_v57 = vor.u32 %v765_v47, %v599_v48 }
  0x1a   :  { %325 = vmatpush.bf16.msra.mxu3 %v670_v38  ;;  %v780_v56 = vld [vmem:[#allocation2 + $0xb4] sm:$0xf0]  ;;  %v666_v58 = vor.u32 %v781_v51, %v663_v52  ;;  %v763_v59 = vld [vmem:[#allocation2 + $0x34] sm:$0xf]  ;;  %v591_v60 = vld [vmem:[#allocation2 + $0x38] sm:$0xf0]  ;;  %v590_v62 = vor.u32 %v764_v54, %v589_v53 }
  0x1b   :  { %v779_v61 = vld [vmem:[#allocation2 + $0xb4] sm:$0xf]  ;;  %v654_v63 = vor.u32 %v780_v56, %v653_v55  ;;  %v655_v0 = vld [vmem:[#allocation2 + $0xb8] sm:$0xf0]  ;;  %v581_v1 = vld [vmem:[#allocation2 + $0x20] sm:$0xf]  ;;  %v594_v5 = vor.u32 %v763_v59, %v591_v60 }
  0x1c   :  { %338 = vmatpush.bf16.msrb.mxu0 %v610_v45  ;;  %351 = vmatpush.bf16.msrb.mxu1 %v674_v46  ;;  %v762_v2 = vld [vmem:[#allocation2 + $0x24] sm:$0xf0]  ;;  %v645_v3 = vld [vmem:[#allocation2 + $0xa0] sm:$0xf]  ;;  %v658_v6 = vor.u32 %v779_v61, %v655_v0  ;;  %v761_v7 = vld [vmem:[#allocation2 + $0x24] sm:$0xf] }
  0x1d   :  { %313 = vmatpush.bf16.msra.mxu2 %v598_v49  ;;  %v778_v4 = vld [vmem:[#allocation2 + $0xa4] sm:$0xf0]  ;;  %v583_v8 = vld [vmem:[#allocation2 + $0x28] sm:$0xf0]  ;;  %v582_v9 = vor.u32 %v762_v2, %v581_v1  ;;  %v777_v11 = vld [vmem:[#allocation2 + $0xa4] sm:$0xf] }
  0x1e   :  { %326 = vmatpush.bf16.msra.mxu3 %v662_v50  ;;  %v646_v10 = vor.u32 %v778_v4, %v645_v3  ;;  %v647_v12 = vld [vmem:[#allocation2 + $0xa8] sm:$0xf0]  ;;  %v586_v13 = vor.u32 %v761_v7, %v583_v8  ;;  %v573_v15 = vld [vmem:[#allocation2 + $0x10] sm:$0xf]  ;;  %v760_v16 = vld [vmem:[#allocation2 + $0x14] sm:$0xf0] }
  0x1f   :  { %v650_v14 = vor.u32 %v777_v11, %v647_v12  ;;  %v637_v17 = vld [vmem:[#allocation2 + $0x90] sm:$0xf]  ;;  %v574_v18 = vor.u32 %v760_v16, %v573_v15  ;;  %v776_v19 = vld [vmem:[#allocation2 + $0x94] sm:$0xf0]  ;;  %v759_v20 = vld [vmem:[#allocation2 + $0x14] sm:$0xf] }
  0x20   :  { %339 = vmatpush.bf16.msrb.mxu0 %v602_v57  ;;  %352 = vmatpush.bf16.msrb.mxu1 %v666_v58  ;;  %v575_v21 = vld [vmem:[#allocation2 + $0x18] sm:$0xf0]  ;;  %v638_v22 = vor.u32 %v776_v19, %v637_v17  ;;  %v775_v24 = vld [vmem:[#allocation2 + $0x94] sm:$0xf]  ;;  %v565_v27 = vld [vmem:[#allocation2] sm:$0xf] }
  0x21   :  { %314 = vmatpush.bf16.msra.mxu2 %v590_v62  ;;  %v578_v23 = vor.u32 %v759_v20, %v575_v21  ;;  %v639_v25 = vld [vmem:[#allocation2 + $0x98] sm:$0xf0]  ;;  %v758_v28 = vld [vmem:[#allocation2 + $0x4] sm:$0xf0]  ;;  %v629_v29 = vld [vmem:[#allocation2 + $0x80] sm:$0xf] }
  0x22   :  { %327 = vmatpush.bf16.msra.mxu3 %v654_v63  ;;  %v642_v26 = vor.u32 %v775_v24, %v639_v25  ;;  %v566_v30 = vor.u32 %v758_v28, %v565_v27  ;;  %v774_v31 = vld [vmem:[#allocation2 + $0x84] sm:$0xf0]  ;;  %v757_v32 = vld [vmem:[#allocation2 + $0x4] sm:$0xf]  ;;  %v567_v33 = vld [vmem:[#allocation2 + $0x8] sm:$0xf0] }
  0x23   :  { %v630_v34 = vor.u32 %v774_v31, %v629_v29  ;;  %v570_v35 = vor.u32 %v757_v32, %v567_v33  ;;  %v773_v36 = vld [vmem:[#allocation2 + $0x84] sm:$0xf]  ;;  %v631_v37 = vld [vmem:[#allocation2 + $0x88] sm:$0xf0]  ;;  %v804_v39 = vld [vmem:[#allocation4 + $0x78] sm:$0xff] }
  0x24   :  { %340 = vmatpush.bf16.msrb.mxu0 %v594_v5  ;;  %353 = vmatpush.bf16.msrb.mxu1 %v658_v6  ;;  %v634_v38 = vor.u32 %v773_v36, %v631_v37  ;;  %v796_v40 = vld [vmem:[#allocation4 + $0x38] sm:$0xff]  ;;  %v803_v41 = vld [vmem:[#allocation4 + $0x70] sm:$0xff]  ;;  %v802_v43 = vld [vmem:[#allocation4 + $0x68] sm:$0xff] }
  0x25   :  { %315 = vmatpush.bf16.msra.mxu2 %v582_v9  ;;  %v795_v42 = vld [vmem:[#allocation4 + $0x30] sm:$0xff]  ;;  %v794_v44 = vld [vmem:[#allocation4 + $0x28] sm:$0xff]  ;;  %v801_v45 = vld [vmem:[#allocation4 + $0x60] sm:$0xff] }
  0x26   :  { %328 = vmatpush.bf16.msra.mxu3 %v646_v10  ;;  %v793_v46 = vld [vmem:[#allocation4 + $0x20] sm:$0xff]  ;;  %v800_v47 = vld [vmem:[#allocation4 + $0x58] sm:$0xff]  ;;  %v799_v49 = vld [vmem:[#allocation4 + $0x50] sm:$0xff] }
  0x27   :  { %v62_v48 = vld [vmem:[%s951_s2] sm:$0x3]  ;;  %v792_v62 = vld [vmem:[#allocation4 + $0x18] sm:$0xff]  ;;  %v798_v63 = vld [vmem:[#allocation4 + $0x48] sm:$0xff] }
  0x28   :  { %341 = vmatpush.bf16.msrb.mxu0 %v586_v13  ;;  %354 = vmatpush.bf16.msrb.mxu1 %v650_v14  ;;  %v64_v50 = vperm.slane %v62_v48, 0  ;;  %v65_v51 = vperm.slane %v62_v48, 1  ;;  %v791_v0 = vld [vmem:[#allocation4 + $0x10] sm:$0xff]  ;;  %v797_v1 = vld [vmem:[#allocation4 + $0x40] sm:$0xff]  ;;  %v790_v2 = vld [vmem:[#allocation4 + $0x8] sm:$0xff] }
  0x29   :  { %316 = vmatpush.bf16.msra.mxu2 %v574_v18  ;;  %v789_v3 = vld [vmem:[#allocation4] sm:$0xff] }
  0x2a   :  { %329 = vmatpush.bf16.msra.mxu3 %v638_v22  ;;  %v144_v4 = vld [vmem:[%s953_s4] sm:$0x3] }
  0x2b   :  { %v147_v5 = vperm.slane %v144_v4, 1  ;;  %v146_v10 = vperm.slane %v144_v4, 0  ;;  %v811_v24 = vld [vmem:[%s955_s6] ss:$0 sm:$0xff] }
  0x2c   :  { %342 = vmatpush.bf16.msrb.mxu0 %v578_v23  ;;  %355 = vmatpush.bf16.msrb.mxu1 %v642_v26 }
  0x2d   :  { %317 = vmatpush.bf16.msra.mxu2 %v566_v30 }
  0x2e   :  { %330 = vmatpush.bf16.msra.mxu3 %v630_v34 }
  0x30   :  { %343 = vmatpush.bf16.msrb.mxu0 %v570_v35  ;;  %356 = vmatpush.bf16.msrb.mxu1 %v634_v38 }
  0x31   :  { %498 = vmatpush.bf16.msrb.mxu2 %v796_v40 }
  0x32   :  { %511 = vmatpush.bf16.msrb.mxu3 %v804_v39 }
  0x35   :  { %499 = vmatpush.bf16.msrb.mxu2 %v795_v42 }
  0x36   :  { %512 = vmatpush.bf16.msrb.mxu3 %v803_v41 }
  0x39   :  { %500 = vmatpush.bf16.msrb.mxu2 %v794_v44 }
  0x3a   :  { %513 = vmatpush.bf16.msrb.mxu3 %v802_v43 }
  0x3d   :  { %501 = vmatpush.bf16.msrb.mxu2 %v793_v46 }
  0x3e   :  { %514 = vmatpush.bf16.msrb.mxu3 %v801_v45 }
  0x41   :  { %502 = vmatpush.bf16.msrb.mxu2 %v792_v62 }
  0x42   :  { %515 = vmatpush.bf16.msrb.mxu3 %v800_v47 }
  0x45   :  { %503 = vmatpush.bf16.msrb.mxu2 %v791_v0 }
  0x46   :  { %516 = vmatpush.bf16.msrb.mxu3 %v799_v49 }
  0x49   :  { %504 = vmatpush.bf16.msrb.mxu2 %v790_v2 }
  0x4a   :  { %517 = vmatpush.bf16.msrb.mxu3 %v798_v63 }
  0x4d   :  { %505 = vmatpush.bf16.msrb.mxu2 %v789_v3 }
  0x4e   :  { %518 = vmatpush.bf16.msrb.mxu3 %v797_v1 }
  0x90   :  { %v91_v52 = vpop.f32.mrf.mxu0  ;;  %v104_v54 = vpop.f32.mrf.mxu1 }
  0x91   :  { %v92_v53 = vadd.f32 %v91_v52, %v64_v50  ;;  %v105_v55 = vadd.f32 %v104_v54, %v65_v51 }
  0x93   :  { %v108_v56 = vmax.f32 %v92_v53, 0.0  ;;  %v109_v57 = vmax.f32 %v105_v55, 0.0 }
  0x95   :  { %v110_v58 = vpack.c.bf16 %v108_v56, %v108_v56  ;;  %v111_v59 = vpack.c.bf16 %v109_v57, %v109_v57 }
  0x97   :  { %318 = vmatmul.bf16.vlgmr.msra.gmra.mxu2 %v110_v58  ;;  %344 = vmatmul.bf16.vlgmr.msrb.gmra.mxu0 %v110_v58 }
  0x98   :  { %331 = vmatmul.bf16.vlgmr.msra.gmra.mxu3 %v111_v59  ;;  %357 = vmatmul.bf16.vlgmr.msrb.gmra.mxu1 %v111_v59  ;;  %v93_v60 = vpop.f32.mrf.mxu0  ;;  %v106_v61 = vpop.f32.mrf.mxu1 }
 0x114   :  { %v345_v6 = vpop.f32.mrf.mxu0 }
 0x115   :  { %v346_v7 = vadd.f32 %v345_v6, %v147_v5  ;;  %v358_v8 = vpop.f32.mrf.mxu1 }
 0x117   :  { %v359_v9 = vadd.f32 %v358_v8, %v346_v7 }
 0x119   :  { %v363_v11 = vmax.f32 %v359_v9, 0.0 }
 0x11a   :  { %v319_v12 = vpop.f32.mrf.mxu2 }
 0x11b   :  { %v365_v13 = vpack.c.bf16 %v363_v11, %v363_v11  ;;  %v320_v14 = vadd.f32 %v319_v12, %v146_v10  ;;  %v332_v15 = vpop.f32.mrf.mxu3 }
 0x11c   :  { %v347_v16 = vpop.f32.mrf.mxu0 }
 0x11d   :  { %v333_v17 = vadd.f32 %v332_v15, %v320_v14  ;;  %v360_v18 = vpop.f32.mrf.mxu1  ;;  %519 = vmatmul.bf16.vlgmr.msrb.gmra.mxu3 %v365_v13 }
 0x11f   :  { %v362_v19 = vmax.f32 %v333_v17, 0.0 }
 0x121   :  { %v364_v20 = vpack.c.bf16 %v362_v19, %v362_v19 }
 0x122   :  { %v321_v21 = vpop.f32.mrf.mxu2 }
 0x123   :  { %v334_v22 = vpop.f32.mrf.mxu3  ;;  %506 = vmatmul.bf16.vlgmr.msrb.gmra.mxu2 %v364_v20 }
 0x1a0   :  { %v520_v23 = vpop.f32.mrf.mxu3 }
 0x1a6   :  { %v507_v25 = vpop.f32.mrf.mxu2 }
 0x1a7   :  { %v508_v26 = vadd.f32 %v811_v24, %v507_v25 }
 0x1a8   :  { %v522_v27 = vpop.f32.mrf.mxu3 }
 0x1a9   :  { %v521_v28 = vadd.f32 %v520_v23, %v508_v26 }
 0x1ab   :  { %524 = vmax.xlane.f32.xlu0 %v521_v28 }
 0x1ae   :  { %v509_v29 = vpop.f32.mrf.mxu2 }
 0x21e   :  { %v525_v30 = vpop.xlane.xlu0 %524 }
 0x21f   :  { %v526_v31 = vsub.f32 %v521_v28, %v525_v30 }
 0x221   :  { %v527_v32 = vmul.f32 1.442695, %v526_v31 }
 0x223   :  { %812 = vpow2.f32 %v527_v32 }
 0x229   :  { %v813_v33 = vpop.eup %812 }
 0x22a   :  { %529 = vadd.xlane.f32.xlu0 %v813_v33 }
 0x29d   :  { %v530_v34 = vpop.xlane.xlu0 %529 }
 0x29e   :  { %814 = vrcp.f32 %v530_v34  ;;  %v542_v38 = vand.u32 2147483648, %v530_v34  ;;  %v540_v40 = vand.u32 2147483647, %v530_v34  ;;  %vm536_vm2 = vweird.f32 %v530_v34 }
 0x2a0   :  { %v543_v42 = vor.u32 1.1754944e-38, %v542_v38  ;;  %vm541_vm4 = vcmp.eq.f32.partialorder %v540_v40, 8.507059e+37 }
 0x2a4   :  { %v815_v35 = vpop.eup %814 }
 0x2a5   :  { %v532_v36 = vmul.f32 %v815_v35, %v530_v34  ;;  %vm537_vm1 = vweird.f32 %v815_v35 }
 0x2a6   :  { %vm538_vm3 = vmor %vm536_vm2, %vm537_vm1 }
 0x2a7   :  { %v533_v37 = vsub.f32 1.0, %v532_v36 }
 0x2a9   :  { %v534_v39 = vmul.f32 %v815_v35, %v533_v37 }
 0x2ab   :  { %v535_v41 = vadd.f32 %v815_v35, %v534_v39 }
 0x2ad   :  { %v539_v43 = vsel %vm538_vm3, %v815_v35, %v535_v41 }
 0x2ae   :  { %v544_v44 = vsel %vm541_vm4, %v543_v42, %v539_v43 }
 0x2af   :  { %v545_v45 = vmul.f32 %v813_v33, %v544_v44 }
 0x2b1   :  { %546 = vst [vmem:[%s956_s7] sm:$0xff] %v545_v45 }
 0x2b2   :  { %551 = vsyncpa [#allocation3], 1 }
 0x2b3   :  { %552 = vsyncpa [#allocation5], 1 }

</bundles_post_ra>
